<compile_context>
chip_gen: v6e
topology: v6e:2x2x1
jax: 0.10.0
libtpu: 0.0.40
codegen_flags: <defaults>
</compile_context>

<pallas_src>
import jax
import jax.numpy as jnp
from jax.experimental import pallas as pl
from jax.experimental.pallas import tpu as pltpu

# Small, deterministic synthetic shapes (original script used BATCH_SIZE=3000).
BATCH_SIZE = 48
EMBED_DIM = 32
VOCAB_SIZE = 256
MAX_TILE_B = 512     # rows per grid step cap; multiple of 8 (and of 256 for MXU)


def sgnons_kernel(idx_ref, emb_ref, w_ref, b_ref, out_ref):
    """One-hot MXU gather + linear (bf16 MXU, f32 acc) + f32 log_softmax.

    idx_ref : (TILE_B, 1)  int32    VMEM  word indices for this tile
    emb_ref : (V, E)       bfloat16 VMEM, resident   embedding table
    w_ref   : (E, V)       bfloat16 VMEM, resident   linear weight (pre-transposed)
    b_ref   : (1, V)       float32  VMEM, resident   linear bias
    out_ref : (TILE_B, V)  float32  VMEM             log-probabilities tile
    """
    tile_b, v = out_ref.shape

    # Vectorized embedding gather via a one-hot matmul on the MXU.
    idx = idx_ref[...]                                             # (TILE_B, 1)
    cols = jax.lax.broadcasted_iota(jnp.int32, (tile_b, v), 1)     # (TILE_B, V)
    onehot = (idx == cols).astype(jnp.bfloat16)                    # (TILE_B, V)
    # Exact bf16 row values, accumulated in f32.
    evec = jnp.dot(onehot, emb_ref[...],
                   preferred_element_type=jnp.float32)             # (TILE_B, E)

    # Linear layer: (TILE_B, E) @ (E, V), bf16 MXU inputs, f32 accumulation.
    logits = jnp.dot(evec.astype(jnp.bfloat16), w_ref[...],
                     preferred_element_type=jnp.float32) + b_ref[...]

    # log_softmax over dim=1 (numerically stable, all f32 on VPU/EUP/XLU).
    m = jnp.max(logits, axis=1, keepdims=True)
    shifted = logits - m
    lse = jnp.log(jnp.sum(jnp.exp(shifted), axis=1, keepdims=True))
    out_ref[...] = shifted - lse


def sgnons_prepare_params(emb_table, w, b):
    """One-time parameter prep (outside the per-step hot path).

    emb_table: (V, E) f32 -> bf16 (it is consumed by a bf16 MXU matmul anyway)
    w        : (V, E) torch-layout linear weight -> pre-transposed (E, V) bf16
    b        : (V,)   -> lane-dense (1, V) f32 row
    """
    return (emb_table.astype(jnp.bfloat16),
            jnp.transpose(w).astype(jnp.bfloat16),
            b.astype(jnp.float32).reshape(1, -1))


def sgnons_forward(x, emb_bf16, w_ev_bf16, b_row, *, max_tile_b=MAX_TILE_B):
    """x: (B,) int indices. Returns (B, V) f32 log-probabilities."""
    V, E = emb_bf16.shape
    B = x.shape[0]

    # Clamp indices (PyTorch would raise on OOB) and pick the batch tile.
    idx = jnp.clip(x.astype(jnp.int32), 0, V - 1)
    b8 = pl.cdiv(B, 8) * 8
    tile_b = b8 if b8 <= max_tile_b else max_tile_b   # whole batch if it fits
    b_pad = pl.cdiv(B, tile_b) * tile_b
    if b_pad != B:
        idx = jnp.pad(idx, (0, b_pad - B))
    idx2 = idx.reshape(b_pad, 1)
    num_tiles = b_pad // tile_b

    out = pl.pallas_call(
        sgnons_kernel,
        grid=(num_tiles,),
        in_specs=[
            pl.BlockSpec((tile_b, 1), lambda i: (i, 0)),   # indices, tiled on i
            pl.BlockSpec((V, E), lambda i: (0, 0)),        # emb table, resident
            pl.BlockSpec((E, V), lambda i: (0, 0)),        # weight (E,V), resident
            pl.BlockSpec((1, V), lambda i: (0, 0)),        # bias, resident
        ],
        out_specs=pl.BlockSpec((tile_b, V), lambda i: (i, 0)),
        out_shape=jax.ShapeDtypeStruct((b_pad, V), jnp.float32),
        compiler_params=pltpu.CompilerParams(
            dimension_semantics=("parallel",)),
    )(idx2, emb_bf16, w_ev_bf16, b_row)
    return out[:B]


def sgnons_reference_bf16(x, emb_bf16, w_ev_bf16, b_row):
    """Pure-JAX reference with the same bf16 MXU inputs as the kernel."""
    idx = jnp.clip(x.astype(jnp.int32), 0, emb_bf16.shape[0] - 1)
    evec = emb_bf16[idx]
    logits = jnp.dot(evec, w_ev_bf16,
                     preferred_element_type=jnp.float32) + b_row
    return jax.nn.log_softmax(logits, axis=1)


def sgnons_reference_f32(x, emb_table, w, b):
    """Pure-JAX f32 reference matching the PyTorch forward exactly."""
    embed_vec = emb_table[x]
    logits = embed_vec @ w.T + b
    return jax.nn.log_softmax(logits, axis=1)


if __name__ == "__main__":
    key = jax.random.PRNGKey(0)
    k_idx, k_emb, k_w, k_b = jax.random.split(key, 4)

    # Deterministic parameter init mirroring nn.Embedding / nn.Linear shapes.
    emb_table = jax.random.normal(k_emb, (VOCAB_SIZE, EMBED_DIM), jnp.float32)
    bound = 1.0 / jnp.sqrt(jnp.float32(EMBED_DIM))
    w = jax.random.uniform(k_w, (VOCAB_SIZE, EMBED_DIM), jnp.float32, -bound, bound)
    b = jax.random.uniform(k_b, (VOCAB_SIZE,), jnp.float32, -bound, bound)

    # Input: BATCH_SIZE word indices.
    x = jax.random.randint(k_idx, (BATCH_SIZE,), 0, VOCAB_SIZE, jnp.int32)

    # Parameter prep happens once; per-call path only runs the pallas_call.
    emb_bf16, w_ev_bf16, b_row = sgnons_prepare_params(emb_table, w, b)
    fwd = jax.jit(lambda idx: sgnons_forward(idx, emb_bf16, w_ev_bf16, b_row))

    out = jax.block_until_ready(fwd(x))
    assert out.shape == (BATCH_SIZE, VOCAB_SIZE)

    # Tight check against the bf16-matched reference (same MXU math).
    ref = sgnons_reference_bf16(x, emb_bf16, w_ev_bf16, b_row)
    assert jnp.allclose(out, ref, atol=5e-5, rtol=5e-5), "mismatch vs bf16 reference"

    # Loose check against the exact f32 PyTorch math (bf16 param cast only).
    ref32 = sgnons_reference_f32(x, emb_table, w, b)
    assert jnp.allclose(out, ref32, atol=3e-2), "mismatch vs f32 reference"

    print("KERNEL_OK")
</pallas_src>

<mosaic_0001>
module attributes {stable_mosaic.version = 11 : i64} {
  func.func @sgnons_kernel(%arg0: i32, %arg1: memref<48x1xi32, #tpu.memory_space<vmem>>, %arg2: memref<256x32xbf16, #tpu.memory_space<vmem>>, %arg3: memref<32x256xbf16, #tpu.memory_space<vmem>>, %arg4: memref<1x256xf32, #tpu.memory_space<vmem>>, %arg5: memref<48x256xf32, #tpu.memory_space<vmem>>) attributes {dimension_semantics = [#tpu.dimension_semantics<parallel>], iteration_bounds = array<i64: 1>, scalar_prefetch = 0 : i64, scratch_operands = 0 : i64, tpu.core_type = #tpu.core_type<tc>, window_params = [{transform_indices = @transform_0, window_bounds = array<i64: 48, 1>}, {pipeline_mode = #tpu.pipeline_mode<synchronous>, transform_indices = @transform_1, window_bounds = array<i64: 256, 32>}, {pipeline_mode = #tpu.pipeline_mode<synchronous>, transform_indices = @transform_2, window_bounds = array<i64: 32, 256>}, {pipeline_mode = #tpu.pipeline_mode<synchronous>, transform_indices = @transform_3, window_bounds = array<i64: 1, 256>}, {transform_indices = @transform_4, window_bounds = array<i64: 48, 256>}]} {
    %c0 = arith.constant 0 : index
    %c0_0 = arith.constant 0 : index
    %0 = vector.load %arg1[%c0, %c0_0] : memref<48x1xi32, #tpu.memory_space<vmem>>, vector<48x1xi32>
    %1 = tpu.iota {dimensions = array<i32: 1>} : vector<48x256xi32>
    %2 = vector.broadcast %0 : vector<48x1xi32> to vector<48x256xi32>
    %3 = arith.cmpi eq, %2, %1 : vector<48x256xi32>
    %4 = arith.extui %3 : vector<48x256xi1> to vector<48x256xi32>
    %5 = arith.sitofp %4 : vector<48x256xi32> to vector<48x256xf32>
    %6 = arith.truncf %5 : vector<48x256xf32> to vector<48x256xbf16>
    %c0_1 = arith.constant 0 : index
    %c0_2 = arith.constant 0 : index
    %7 = vector.load %arg2[%c0_1, %c0_2] : memref<256x32xbf16, #tpu.memory_space<vmem>>, vector<256x32xbf16>
    %cst = arith.constant dense<0.000000e+00> : vector<48x32xf32>
    %8 = tpu.matmul %6, %7, %cst {dimension_numbers = #tpu.dot_dimension_numbers<[1], [0], [0], [1], [0, 0, 1, 1], [], []>} : vector<48x256xbf16>, vector<256x32xbf16>, vector<48x32xf32> -> vector<48x32xf32>
    %9 = arith.truncf %8 : vector<48x32xf32> to vector<48x32xbf16>
    %c0_3 = arith.constant 0 : index
    %c0_4 = arith.constant 0 : index
    %10 = vector.load %arg3[%c0_3, %c0_4] : memref<32x256xbf16, #tpu.memory_space<vmem>>, vector<32x256xbf16>
    %cst_5 = arith.constant dense<0.000000e+00> : vector<48x256xf32>
    %11 = tpu.matmul %9, %10, %cst_5 {dimension_numbers = #tpu.dot_dimension_numbers<[1], [0], [0], [1], [0, 0, 1, 1], [], []>} : vector<48x32xbf16>, vector<32x256xbf16>, vector<48x256xf32> -> vector<48x256xf32>
    %c0_6 = arith.constant 0 : index
    %c0_7 = arith.constant 0 : index
    %12 = vector.load %arg4[%c0_6, %c0_7] : memref<1x256xf32, #tpu.memory_space<vmem>>, vector<1x256xf32>
    %13 = vector.broadcast %12 : vector<1x256xf32> to vector<48x256xf32>
    %14 = arith.addf %11, %13 : vector<48x256xf32>
    %cst_8 = arith.constant dense<0xFF800000> : vector<48xf32>
    %15 = vector.multi_reduction <maximumf>, %14, %cst_8 [1] : vector<48x256xf32> to vector<48xf32>
    %16 = vector.shape_cast %15 : vector<48xf32> to vector<48x1xf32>
    %17 = vector.broadcast %16 : vector<48x1xf32> to vector<48x256xf32>
    %18 = arith.subf %14, %17 : vector<48x256xf32>
    %19 = math.exp %18 : vector<48x256xf32>
    %cst_9 = arith.constant dense<0.000000e+00> : vector<48xf32>
    %20 = vector.multi_reduction <add>, %19, %cst_9 [1] : vector<48x256xf32> to vector<48xf32>
    %21 = vector.shape_cast %20 : vector<48xf32> to vector<48x1xf32>
    %22 = math.log %21 : vector<48x1xf32>
    %23 = vector.broadcast %22 : vector<48x1xf32> to vector<48x256xf32>
    %24 = arith.subf %18, %23 : vector<48x256xf32>
    %c0_10 = arith.constant 0 : index
    %c0_11 = arith.constant 0 : index
    %25 = vector.load %arg5[%c0_10, %c0_11] : memref<48x256xf32, #tpu.memory_space<vmem>>, vector<48x256xf32>
    tpu.vector_store %arg5[%c0_10, %c0_11], %24 {strides = array<i32>} : memref<48x256xf32, #tpu.memory_space<vmem>>, vector<48x256xf32>,
    return
  }
  func.func @transform_0(%arg0: i32) -> (i32, i32) {
    %c0_i32 = arith.constant 0 : i32
    %c0_i32_0 = arith.constant 0 : i32
    return %arg0, %c0_i32 : i32, i32
  }
  func.func @transform_1(%arg0: i32) -> (i32, i32) {
    %c0_i32 = arith.constant 0 : i32
    %c0_i32_0 = arith.constant 0 : i32
    %c0_i32_1 = arith.constant 0 : i32
    return %c0_i32, %c0_i32_0 : i32, i32
  }
  func.func @transform_2(%arg0: i32) -> (i32, i32) {
    %c0_i32 = arith.constant 0 : i32
    %c0_i32_0 = arith.constant 0 : i32
    %c0_i32_1 = arith.constant 0 : i32
    return %c0_i32, %c0_i32_0 : i32, i32
  }
  func.func @transform_3(%arg0: i32) -> (i32, i32) {
    %c0_i32 = arith.constant 0 : i32
    %c0_i32_0 = arith.constant 0 : i32
    %c0_i32_1 = arith.constant 0 : i32
    return %c0_i32, %c0_i32_0 : i32, i32
  }
  func.func @transform_4(%arg0: i32) -> (i32, i32) {
    %c0_i32 = arith.constant 0 : i32
    %c0_i32_0 = arith.constant 0 : i32
    return %arg0, %c0_i32 : i32, i32
  }
}

</mosaic_0001>

<bundles_post_ra>
// kernel: _lambda_.1
= control target key start
LH: loop header
LB: loop body
LE: loop exit
PB: predicated region body
PF: predicated region fallthrough
CT: control target
= control target key end

     0   :  { %9 = vsyncpa [#allocation3], 0  ;;  %s847_s0 = inlined_call_operand.vmem [shape: s32[48,1], index: 0, kind: input, shape index: {}]   ;;  %s848_s1 = inlined_call_operand.hbm [shape: bf16[256,32], index: 1, kind: input, shape index: {}]   ;;  %s849_s2 = inlined_call_operand.vmem [shape: bf16[32,256], index: 2, kind: input, shape index: {}]   ;;  %s850_s3 = inlined_call_operand.vmem [shape: f32[1,256], index: 3, kind: input, shape index: {}]   ;;  %s851_s4 = inlined_call_operand.hbm [shape: f32[48,256], index: 4, kind: output, shape index: {}]  }
   0x1   :  { %10 = vsyncpa [#allocation4], 0  ;;  %s717_s15 = smov [#allocation2]  }
   0x2   :  { %s18_s16 = sshll.u32 %s717_s15, 4  ;;  %s19_s16 = int_to_ptr.vmem [resolvable:$true] %s18_s16 }
   0x3   :  { %s681_s17 = scalar_lea.vmem %s19_s16, 2048  ;;  %p686_p1 = scmp.lt.s32.totalorder %s19_s16, %s19_s16 }
   0x4   :  { %p682_p0 = scmp.ne.s32.totalorder %s19_s16, %s681_s17  ;;  %p687_p2 = scmp.lt.s32.totalorder %s681_s17, %s681_s17 }
   0x6   :  { %p688_p3 = por %p687_p2, %p686_p1 }
   0x8   :  { %p689_p4 = pnand %p688_p3, %p682_p0 }
   0xa   :  { %692 = shalt.err (!%p689_p4)
}
   0xb   :  { %s718_s18 = smov 64   ;;  %s719_s19 = smov 4  }
   0xc   :  { %24 = dma.hbm_to_vmem [thread:$0]  %s848_s1, 2048, %s19_s16, [#allocation3], %s718_s18, %s718_s18, %s719_s19  }
   0xd   :  { %713 = dma.done.wait [#allocation3], 2048  }
   0xe   :  { %714 = vsyncadd [#allocation3], 4294965248  ;;  %v720_v0 = vmov 0   ;;  %v35_v1 = vld [vmem:[%s847_s0 + $0x10] sm:$0xff]  ;;  %v33_v2 = vld [vmem:[%s847_s0] sm:$0xff]  ;;  %v39_v23 = vlaneseq }
   0xf   :  { %614 = vset.pattern.permute.xlu1 %v720_v0  ;;  %613 = vset.pattern.permute.xlu0 %v720_v0  ;;  %v36_v3 = vld [vmem:[%s847_s0 + $0x18] sm:$0xff]  ;;  %v34_v4 = vld [vmem:[%s847_s0 + $0x8] sm:$0xff]  ;;  %v617_v8 = vld [vmem:[#allocation2 + $0x70] sm:$0xff]   ;;  %v721_v30 = vmov 1.0|1.0  }
  0x10   :  { %368 = vmatprep.mubr.bf16.mxu1 %v720_v0  ;;  %49 = vperm.xlu1 %614, %v35_v1   ;;  %v615_v5 = vld [vmem:[#allocation2 + $0x78] sm:$0xff]   ;;  %v38_v7 = vld [vmem:[%s847_s0 + $0x28] sm:$0xff]  ;;  %v37_v9 = vld [vmem:[%s847_s0 + $0x20] sm:$0xff]  ;;  %v40_v24 = vand.u32 127, %v39_v23  ;;  %v297_v58 = vshrl.u32 %v39_v23, 7 }
  0x11   :  { %43 = vperm.xlu0 %613, %v33_v2   ;;  %v616_v6 = vld [vmem:[#allocation2 + $0x38] sm:$0xff]   ;;  %571 = vmatprep.subr.bf16.mxu0 %v615_v5  ;;  %v618_v10 = vld [vmem:[#allocation2 + $0x30] sm:$0xff]   ;;  %v619_v11 = vld [vmem:[#allocation2 + $0x68] sm:$0xff]  }
  0x12   :  { %572 = vmatpush3.bf16.msra.mxu0 %v616_v6  ;;  %v620_v12 = vld [vmem:[#allocation2 + $0x28] sm:$0xff]   ;;  %v621_v13 = vld [vmem:[#allocation2 + $0x60] sm:$0xff]   ;;  %v623_v15 = vld [vmem:[#allocation2 + $0x58] sm:$0xff]   ;;  %v41_v27 = vadd.s32 128, %v40_v24  ;;  %v298_v59 = vsub.s32 0, %v297_v58  ;;  %v302_v60 = vsub.s32 1, %v297_v58 }
  0x13   :  { %573 = vmatprep.subr.bf16.mxu0 %v617_v8  ;;  %v622_v14 = vld [vmem:[#allocation2 + $0x20] sm:$0xff]   ;;  %v624_v16 = vld [vmem:[#allocation2 + $0x18] sm:$0xff]   ;;  %v625_v17 = vld [vmem:[#allocation2 + $0x50] sm:$0xff]  }
  0x14   :  { %52 = vperm.xlu1 %614, %v36_v3   ;;  %v626_v18 = vld [vmem:[#allocation2 + $0x10] sm:$0xff]   ;;  %v627_v19 = vld [vmem:[#allocation2 + $0x48] sm:$0xff]   ;;  %v629_v21 = vld [vmem:[#allocation2 + $0x40] sm:$0xff]  }
  0x15   :  { %46 = vperm.xlu0 %613, %v34_v4   ;;  %v628_v20 = vld [vmem:[#allocation2 + $0x8] sm:$0xff]   ;;  %v630_v22 = vld [vmem:[#allocation2] sm:$0xff]   ;;  %v631_v33 = vld [vmem:[%s849_s2 + $0x14] ss:$8 sps:$4 sm:$0xff]  }
  0x16   :  { %574 = vmatpush3.bf16.msra.mxu0 %v618_v10  ;;  %v633_v34 = vld [vmem:[%s849_s2 + $0x10] ss:$8 sps:$4 sm:$0xff]   ;;  %348 = vmatprep.subr.bf16.mxu1 %v631_v33  ;;  %v634_v35 = vld [vmem:[%s849_s2 + $0x4] ss:$8 sps:$4 sm:$0xff]   ;;  %v636_v36 = vld [vmem:[%s849_s2] ss:$8 sps:$4 sm:$0xff]  }
  0x17   :  { %575 = vmatprep.subr.bf16.mxu0 %v619_v11  ;;  %349 = vmatpush1.bf16.msra.mxu1 %v633_v34  ;;  %v294_v61 = vld [vmem:[%s850_s3] sm:$0x3]  ;;  %s722_s3 = smov [#allocation5]  }
  0x18   :  { %58 = vperm.xlu1 %614, %v38_v7   ;;  %350 = vmatprep.subr.bf16.mxu1 %v634_v35  ;;  %v299_v62 = vrot.slane %v294_v61, %v298_v59  ;;  %v303_v63 = vrot.slane %v294_v61, %v302_v60  ;;  %s512_s15 = sshll.u32 %s722_s3, 4  ;;  %s513_s15 = int_to_ptr.vmem [resolvable:$true] %s512_s15 }
  0x19   :  { %55 = vperm.xlu0 %613, %v37_v9   ;;  %s693_s16 = scalar_lea.vmem %s513_s15, 1536  ;;  %p698_p6 = scmp.lt.s32.totalorder %s513_s15, %s513_s15 }
  0x1a   :  { %576 = vmatpush3.bf16.msra.mxu0 %v620_v12  ;;  %p694_p5 = scmp.ne.s32.totalorder %s513_s15, %s693_s16  ;;  %p699_p7 = scmp.lt.s32.totalorder %s693_s16, %s693_s16 }
  0x1b   :  { %577 = vmatprep.subr.bf16.mxu0 %v621_v13  ;;  %351 = vmatpush1.bf16.msra.mxu1 %v636_v36 }
  0x1c   :  { %p700_p8 = por %p699_p7, %p698_p6 }
  0x1e   :  { %578 = vmatpush3.bf16.msra.mxu0 %v622_v14  ;;  %p701_p9 = pnand %p700_p8, %p694_p5 }
  0x1f   :  { %579 = vmatprep.subr.bf16.mxu0 %v623_v15 }
  0x22   :  { %580 = vmatpush3.bf16.msra.mxu0 %v624_v16 }
  0x23   :  { %581 = vmatprep.subr.bf16.mxu0 %v625_v17 }
  0x26   :  { %582 = vmatpush3.bf16.msra.mxu0 %v626_v18 }
  0x27   :  { %583 = vmatprep.subr.bf16.mxu0 %v627_v19 }
  0x2a   :  { %584 = vmatpush3.bf16.msra.mxu0 %v628_v20 }
  0x2b   :  { %585 = vmatprep.subr.bf16.mxu0 %v629_v21 }
  0x2e   :  { %586 = vmatpush3.bf16.msra.mxu0 %v630_v22 }
  0x8b   :  { %v50_v25 = vpop.permute.xlu1 %49 }
  0x8c   :  { %v44_v26 = vpop.permute.xlu0 %43  ;;  %vm65_vm0 = vcmp.eq.s32.totalorder %v50_v25, %v41_v27  ;;  %vm64_vm9 = vcmp.eq.s32.totalorder %v50_v25, %v40_v24 }
  0x8d   :  { %vm60_vm4 = vcmp.eq.s32.totalorder %v44_v26, %v40_v24  ;;  %vm61_vm7 = vcmp.eq.s32.totalorder %v44_v26, %v41_v27 }
  0x8f   :  { %v53_v28 = vpop.permute.xlu1 %52 }
  0x90   :  { %v47_v29 = vpop.permute.xlu0 %46  ;;  %vm67_vm1 = vcmp.eq.s32.totalorder %v53_v28, %v41_v27  ;;  %vm66_vm10 = vcmp.eq.s32.totalorder %v53_v28, %v40_v24 }
  0x91   :  { %vm62_vm2 = vcmp.eq.s32.totalorder %v47_v29, %v40_v24  ;;  %vm63_vm3 = vcmp.eq.s32.totalorder %v47_v29, %v41_v27  ;;  %vm556_vm5 = vmpackc.low %vm67_vm1, %vm65_vm0 }
  0x92   :  { %vm554_vm6 = vmpackc.low %vm62_vm2, %vm60_vm4  ;;  %vm326_vm2 = vcmask 261120  }
  0x93   :  { %vm552_vm8 = vmpackc.low %vm63_vm3, %vm61_vm7  ;;  %v59_v31 = vpop.permute.xlu1 %58 }
  0x94   :  { %553 = vmatprep.mubr.msk.bf16.mxu0 %vm552_vm8, %v721_v30  ;;  %v56_v32 = vpop.permute.xlu0 %55  ;;  %vm71_vm11 = vcmp.eq.s32.totalorder %v59_v31, %v41_v27  ;;  %vm558_vm13 = vmpackc.low %vm66_vm10, %vm64_vm9  ;;  %vm70_vm15 = vcmp.eq.s32.totalorder %v59_v31, %v40_v24 }
  0x95   :  { %555 = vmatmul.mubr.msk.bf16.vlgmr.msra.gmra.mxu0 %vm554_vm6, %v721_v30  ;;  %vm69_vm12 = vcmp.eq.s32.totalorder %v56_v32, %v41_v27  ;;  %vm68_vm0 = vcmp.eq.s32.totalorder %v56_v32, %v40_v24 }
  0x96   :  { %557 = vmatprep.mubr.msk.bf16.mxu0 %vm556_vm5, %v721_v30  ;;  %vm560_vm14 = vmpackc.low %vm71_vm11, %vm69_vm12 }
  0x97   :  { %vm562_vm1 = vmpackc.low %vm70_vm15, %vm68_vm0 }
  0x9d   :  { %559 = vmatmul.mubr.msk.bf16.gmra.mxu0 %vm558_vm13, %v721_v30 }
  0x9e   :  { %561 = vmatprep.mubr.msk.bf16.mxu0 %vm560_vm14, %v721_v30 }
  0xa5   :  { %563 = vmatmul.mubr.msk.bf16.gmra.mxu0 %vm562_vm1, %v721_v30 }
 0x155   :  { %v587_v37 = vpop.f32.mrf.mxu0 }
 0x157   :  { %v588_v38 = vpop.f32.mrf.mxu0 }
 0x158   :  { %v589_v41 = vadd.f32 %v588_v38, %v587_v37 }
 0x159   :  { %v590_v39 = vpop.f32.mrf.mxu0 }
 0x15b   :  { %v591_v40 = vpop.f32.mrf.mxu0 }
 0x15c   :  { %v592_v42 = vadd.f32 %v591_v40, %v590_v39 }
 0x15d   :  { %v593_v43 = vpop.f32.mrf.mxu0 }
 0x15e   :  { %v287_v44 = vpack.c.bf16 %v592_v42, %v589_v41 }
 0x15f   :  { %v594_v45 = vpop.f32.mrf.mxu0 }
 0x160   :  { %568 = vmatmul.mubr.msk.bf16.vlgmr.msra.gmra.mxu1 %vm326_vm2, %v287_v44  ;;  %v595_v48 = vadd.f32 %v594_v45, %v593_v43 }
 0x161   :  { %v596_v46 = vpop.f32.mrf.mxu0  ;;  %378 = vmatprep.mubr.bf16.mxu1 %v720_v0 }
 0x163   :  { %v597_v47 = vpop.f32.mrf.mxu0 }
 0x164   :  { %v598_v49 = vadd.f32 %v597_v47, %v596_v46 }
 0x165   :  { %v599_v50 = vpop.f32.mrf.mxu0 }
 0x166   :  { %v288_v51 = vpack.c.bf16 %v598_v49, %v595_v48 }
 0x167   :  { %v600_v52 = vpop.f32.mrf.mxu0 }
 0x168   :  { %569 = vmatmul.mubr.msk.bf16.gmra.mxu1 %vm326_vm2, %v288_v51  ;;  %v601_v55 = vadd.f32 %v600_v52, %v599_v50 }
 0x169   :  { %v602_v53 = vpop.f32.mrf.mxu0  ;;  %388 = vmatprep.mubr.bf16.mxu1 %v720_v0 }
 0x16b   :  { %v603_v54 = vpop.f32.mrf.mxu0 }
 0x16c   :  { %v604_v56 = vadd.f32 %v603_v54, %v602_v53 }
 0x16e   :  { %v289_v57 = vpack.c.bf16 %v604_v56, %v601_v55 }
 0x170   :  { %570 = vmatmul.mubr.msk.bf16.gmra.mxu1 %vm326_vm2, %v289_v57 }
 0x220   :  { %v370_v1 = vpop.f32.mrf.mxu1 }
 0x221   :  { %v371_v3 = vadd.f32 %v370_v1, %v299_v62 }
 0x222   :  { %v372_v2 = vpop.f32.mrf.mxu1 }
 0x223   :  { %v373_v0 = vadd.f32 %v372_v2, %v303_v63 }
 0x224   :  { %v374_v4 = vpop.f32.mrf.mxu1 }
 0x225   :  { %v399_v5 = vmax.f32 %v371_v3, %v373_v0  ;;  %v375_v7 = vadd.f32 %v374_v4, %v299_v62 }
 0x226   :  { %v376_v6 = vpop.f32.mrf.mxu1 }
 0x227   :  { %v377_v8 = vadd.f32 %v376_v6, %v303_v63  ;;  %400 = vmax.xlane.f32.xlu0 %v399_v5 }
 0x228   :  { %v380_v9 = vpop.f32.mrf.mxu1 }
 0x229   :  { %v402_v10 = vmax.f32 %v375_v7, %v377_v8  ;;  %v381_v12 = vadd.f32 %v380_v9, %v299_v62 }
 0x22a   :  { %v382_v11 = vpop.f32.mrf.mxu1 }
 0x22b   :  { %v383_v13 = vadd.f32 %v382_v11, %v303_v63  ;;  %403 = vmax.xlane.f32.xlu1 %v402_v10 }
 0x22c   :  { %v384_v14 = vpop.f32.mrf.mxu1 }
 0x22d   :  { %v405_v15 = vmax.f32 %v381_v12, %v383_v13  ;;  %v385_v17 = vadd.f32 %v384_v14, %v299_v62 }
 0x22e   :  { %v386_v16 = vpop.f32.mrf.mxu1 }
 0x22f   :  { %v387_v18 = vadd.f32 %v386_v16, %v303_v63  ;;  %406 = vmax.xlane.f32.xlu0 %v405_v15 }
 0x230   :  { %v390_v19 = vpop.f32.mrf.mxu1 }
 0x231   :  { %v408_v20 = vmax.f32 %v385_v17, %v387_v18  ;;  %v391_v22 = vadd.f32 %v390_v19, %v299_v62 }
 0x232   :  { %v392_v21 = vpop.f32.mrf.mxu1 }
 0x233   :  { %v393_v23 = vadd.f32 %v392_v21, %v303_v63  ;;  %409 = vmax.xlane.f32.xlu0 %v408_v20 }
 0x234   :  { %v394_v24 = vpop.f32.mrf.mxu1 }
 0x235   :  { %v411_v25 = vmax.f32 %v391_v22, %v393_v23  ;;  %v395_v27 = vadd.f32 %v394_v24, %v299_v62 }
 0x236   :  { %v396_v26 = vpop.f32.mrf.mxu1 }
 0x237   :  { %v397_v28 = vadd.f32 %v396_v26, %v303_v63  ;;  %412 = vmax.xlane.f32.xlu1 %v411_v25 }
 0x239   :  { %v414_v29 = vmax.f32 %v395_v27, %v397_v28 }
 0x23b   :  { %415 = vmax.xlane.f32.xlu0 %v414_v29 }
 0x2b0   :  { %v401_v30 = vpop.xlane.xlu0 %400 }
 0x2b1   :  { %v796_v31 = vsub.f32 %v371_v3, %v401_v30  ;;  %v798_v32 = vsub.f32 %v373_v0, %v401_v30 }
 0x2b3   :  { %v429_v33 = vmul.f32 1.442695, %v796_v31  ;;  %v431_v34 = vmul.f32 1.442695, %v798_v32 }
 0x2b4   :  { %v404_v35 = vpop.xlane.xlu1 %403 }
 0x2b5   :  { %637 = vpow2.f32 %v429_v33  ;;  %v802_v36 = vsub.f32 %v375_v7, %v404_v35  ;;  %v804_v37 = vsub.f32 %v377_v8, %v404_v35 }
 0x2b6   :  { %639 = vpow2.f32 %v431_v34 }
 0x2b7   :  { %v433_v38 = vmul.f32 1.442695, %v802_v36  ;;  %v435_v39 = vmul.f32 1.442695, %v804_v37 }
 0x2b8   :  { %v407_v40 = vpop.xlane.xlu0 %406 }
 0x2b9   :  { %641 = vpow2.f32 %v433_v38  ;;  %v808_v41 = vsub.f32 %v381_v12, %v407_v40  ;;  %v810_v42 = vsub.f32 %v383_v13, %v407_v40 }
 0x2ba   :  { %643 = vpow2.f32 %v435_v39 }
 0x2bb   :  { %v437_v43 = vmul.f32 1.442695, %v808_v41  ;;  %v439_v44 = vmul.f32 1.442695, %v810_v42 }
 0x2bc   :  { %v410_v45 = vpop.xlane.xlu0 %409 }
 0x2bd   :  { %645 = vpow2.f32 %v437_v43  ;;  %v814_v46 = vsub.f32 %v385_v17, %v410_v45  ;;  %v816_v47 = vsub.f32 %v387_v18, %v410_v45 }
 0x2be   :  { %647 = vpow2.f32 %v439_v44 }
 0x2bf   :  { %v441_v48 = vmul.f32 1.442695, %v814_v46  ;;  %v443_v49 = vmul.f32 1.442695, %v816_v47 }
 0x2c0   :  { %v413_v50 = vpop.xlane.xlu1 %412 }
 0x2c1   :  { %649 = vpow2.f32 %v441_v48  ;;  %v820_v51 = vsub.f32 %v391_v22, %v413_v50  ;;  %v822_v52 = vsub.f32 %v393_v23, %v413_v50 }
 0x2c2   :  { %v638_v53 = vpop.eup %637  ;;  %651 = vpow2.f32 %v443_v49 }
 0x2c3   :  { %v640_v54 = vpop.eup %639  ;;  %v445_v55 = vmul.f32 1.442695, %v820_v51  ;;  %v447_v56 = vmul.f32 1.442695, %v822_v52 }
 0x2c4   :  { %v416_v57 = vpop.xlane.xlu0 %415  ;;  %v453_v58 = vadd.f32 %v640_v54, %v638_v53 }
 0x2c5   :  { %653 = vpow2.f32 %v445_v55  ;;  %v826_v59 = vsub.f32 %v395_v27, %v416_v57  ;;  %v828_v60 = vsub.f32 %v397_v28, %v416_v57 }
 0x2c6   :  { %v642_v61 = vpop.eup %641  ;;  %655 = vpow2.f32 %v447_v56  ;;  %454 = vadd.xlane.f32.xlu1 %v453_v58 }
 0x2c7   :  { %v644_v62 = vpop.eup %643  ;;  %v449_v63 = vmul.f32 1.442695, %v826_v59  ;;  %v451_v1 = vmul.f32 1.442695, %v828_v60 }
 0x2c8   :  { %v456_v2 = vadd.f32 %v644_v62, %v642_v61 }
 0x2c9   :  { %657 = vpow2.f32 %v449_v63 }
 0x2ca   :  { %v646_v3 = vpop.eup %645  ;;  %659 = vpow2.f32 %v451_v1  ;;  %457 = vadd.xlane.f32.xlu0 %v456_v2 }
 0x2cb   :  { %v648_v0 = vpop.eup %647 }
 0x2cc   :  { %v459_v4 = vadd.f32 %v648_v0, %v646_v3 }
 0x2ce   :  { %v650_v5 = vpop.eup %649  ;;  %460 = vadd.xlane.f32.xlu1 %v459_v4 }
 0x2cf   :  { %v652_v6 = vpop.eup %651 }
 0x2d0   :  { %v462_v7 = vadd.f32 %v652_v6, %v650_v5 }
 0x2d2   :  { %v654_v8 = vpop.eup %653  ;;  %463 = vadd.xlane.f32.xlu0 %v462_v7 }
 0x2d3   :  { %v656_v9 = vpop.eup %655 }
 0x2d4   :  { %v465_v10 = vadd.f32 %v656_v9, %v654_v8 }
 0x2d6   :  { %v658_v11 = vpop.eup %657  ;;  %466 = vadd.xlane.f32.xlu1 %v465_v10 }
 0x2d7   :  { %v660_v12 = vpop.eup %659 }
 0x2d8   :  { %v468_v13 = vadd.f32 %v660_v12, %v658_v11 }
 0x2da   :  { %469 = vadd.xlane.f32.xlu0 %v468_v13 }
 0x34f   :  { %v455_v14 = vpop.xlane.xlu1 %454 }
 0x350   :  { %661 = vlog2.f32 %v455_v14 }
 0x353   :  { %v458_v15 = vpop.xlane.xlu0 %457 }
 0x354   :  { %663 = vlog2.f32 %v458_v15 }
 0x357   :  { %v461_v16 = vpop.xlane.xlu1 %460 }
 0x358   :  { %665 = vlog2.f32 %v461_v16 }
 0x35b   :  { %v464_v17 = vpop.xlane.xlu0 %463 }
 0x35c   :  { %667 = vlog2.f32 %v464_v17 }
 0x35d   :  { %v662_v18 = vpop.eup %661 }
 0x35e   :  { %v472_v19 = vmul.f32 0.6931472, %v662_v18 }
 0x35f   :  { %v467_v20 = vpop.xlane.xlu1 %466 }
 0x360   :  { %v483_v21 = vsub.f32 %v796_v31, %v472_v19  ;;  %v484_v22 = vsub.f32 %v798_v32, %v472_v19  ;;  %669 = vlog2.f32 %v467_v20 }
 0x361   :  { %v664_v23 = vpop.eup %663 }
 0x362   :  { %495 = vst [vmem:[#allocation5] sm:$0xff] %v483_v21  ;;  %496 = vst [vmem:[#allocation5 + $0x8] sm:$0xff] %v484_v22  ;;  %v474_v24 = vmul.f32 0.6931472, %v664_v23 }
 0x363   :  { %v470_v25 = vpop.xlane.xlu0 %469 }
 0x364   :  { %v485_v26 = vsub.f32 %v802_v36, %v474_v24  ;;  %v486_v27 = vsub.f32 %v804_v37, %v474_v24  ;;  %671 = vlog2.f32 %v470_v25 }
 0x365   :  { %v666_v28 = vpop.eup %665 }
 0x366   :  { %497 = vst [vmem:[#allocation5 + $0x10] sm:$0xff] %v485_v26  ;;  %498 = vst [vmem:[#allocation5 + $0x18] sm:$0xff] %v486_v27  ;;  %v476_v29 = vmul.f32 0.6931472, %v666_v28 }
 0x368   :  { %v487_v30 = vsub.f32 %v808_v41, %v476_v29  ;;  %v488_v31 = vsub.f32 %v810_v42, %v476_v29 }
 0x369   :  { %v668_v32 = vpop.eup %667 }
 0x36a   :  { %499 = vst [vmem:[#allocation5 + $0x20] sm:$0xff] %v487_v30  ;;  %500 = vst [vmem:[#allocation5 + $0x28] sm:$0xff] %v488_v31  ;;  %v478_v33 = vmul.f32 0.6931472, %v668_v32 }
 0x36c   :  { %v489_v34 = vsub.f32 %v814_v46, %v478_v33  ;;  %v490_v35 = vsub.f32 %v816_v47, %v478_v33 }
 0x36d   :  { %v670_v36 = vpop.eup %669 }
 0x36e   :  { %501 = vst [vmem:[#allocation5 + $0x30] sm:$0xff] %v489_v34  ;;  %502 = vst [vmem:[#allocation5 + $0x38] sm:$0xff] %v490_v35  ;;  %v480_v37 = vmul.f32 0.6931472, %v670_v36 }
 0x370   :  { %v491_v38 = vsub.f32 %v820_v51, %v480_v37  ;;  %v492_v39 = vsub.f32 %v822_v52, %v480_v37 }
 0x371   :  { %v672_v40 = vpop.eup %671 }
 0x372   :  { %503 = vst [vmem:[#allocation5 + $0x40] sm:$0xff] %v491_v38  ;;  %504 = vst [vmem:[#allocation5 + $0x48] sm:$0xff] %v492_v39  ;;  %v482_v41 = vmul.f32 0.6931472, %v672_v40 }
 0x374   :  { %v493_v42 = vsub.f32 %v826_v59, %v482_v41  ;;  %v494_v43 = vsub.f32 %v828_v60, %v482_v41 }
 0x376   :  { %505 = vst [vmem:[#allocation5 + $0x50] sm:$0xff] %v493_v42  ;;  %506 = vst [vmem:[#allocation5 + $0x58] sm:$0xff] %v494_v43 }
 0x377   :  { %704 = shalt.err (!%p701_p9)
}
 0x378   :  { %s723_s17 = smov 256   ;;  %s724_s18 = smov 16  }
 0x379   :  { %518 = dma.vmem_to_hbm [thread:$0]  %s513_s15, 1536, %s851_s4, [#allocation4], %s723_s17, %s723_s17, %s724_s18  }
 0x37a   :  { %715 = dma.done.wait [#allocation4], 1536  }
 0x37b   :  { %716 = vsyncadd [#allocation4], 4294965760 }
 0x37c   :  { %522 = vsyncpa [#allocation3], 1 }
 0x37d   :  { %523 = vsyncpa [#allocation4], 1 }

</bundles_post_ra>
